<compile_context>
chip_gen: v7x
topology: tpu7x:2x2x1
jax: 0.10.0
libtpu: 0.0.40
codegen_flags: <defaults>
</compile_context>

<pallas_src>
import functools

import jax
import jax.numpy as jnp
import numpy as np
from jax.experimental import pallas as pl
from jax.experimental.pallas import tpu as pltpu


def _round_up(x, m):
    return ((x + m - 1) // m) * m


def _gelu_tanh(x):
    # tanh-form GELU (EUP tanh). Max abs deviation from exact erf-GELU ~3e-4.
    # TODO(synk): exact erf-based GELU not used (no erf lowering in Mosaic);
    # tanh approximation is applied instead.
    c = 0.7978845608028654  # sqrt(2/pi)
    return 0.5 * x * (1.0 + jnp.tanh(c * (x + 0.044715 * x * x * x)))


def _pick_tm(M):
    """Tail-aware row-tile: largest tile whose zero-padding waste stays small."""
    M8 = _round_up(M, 8)
    for tm in (512, 256, 128, 64, 32, 16, 8):
        if tm <= M8 and _round_up(M, tm) <= max(M8 + 8, int(M8 * 1.25)):
            return tm
    return 8


def _pick_tf(Fp):
    """Largest multiple of 128 that divides Fp and is <= 1024."""
    best = 128
    t = 128
    while t <= min(Fp, 1024):
        if Fp % t == 0:
            best = t
        t += 128
    return best


def _vmem_capacity_bytes():
    try:
        return int(pltpu.get_tpu_info().vmem_capacity_bytes)
    except Exception:
        return 64 << 20  # conservative (v7x per-TC VMEM)


def _resident_footprint(tm, Hp, Fp, out_itemsize):
    return ((Hp * Fp + Fp * Hp) * 2          # w1, w2 bf16 (single-buffered)
            + (Fp + Hp) * 4                  # biases f32
            + 2 * tm * Hp * 2                # x tile, double-buffered bf16
            + 2 * tm * Hp * out_itemsize     # out tile, double-buffered
            + tm * Fp * 4                    # (tm, Fp) f32 GELU intermediate
            + tm * Hp * 4)                   # fc2 f32 result


def _ftiled_footprint(tm, tf, Hp, out_itemsize):
    return (2 * (Hp * tf + tf * Hp) * 2      # streamed weight tiles, double-buffered
            + 2 * (tf + Hp) * 4              # bias tiles
            + 2 * tm * Hp * 2                # x tile
            + 2 * tm * Hp * out_itemsize     # out tile
            + tm * Hp * 4                    # f32 accumulator scratch
            + tm * tf * 4)                   # GELU intermediate


# ----------------------------------------------------------------------------
# Kernel A: fully resident weights, 1-D grid over row tiles.
#   x_ref (tm,Hp) bf16 | w1 (Hp,Fp) bf16 | b1 (1,Fp) f32
#   w2 (Fp,Hp) bf16    | b2 (1,Hp) f32   | o_ref (tm,Hp)
# ----------------------------------------------------------------------------
def _mlp_kernel_resident(x_ref, w1_ref, b1_ref, w2_ref, b2_ref, o_ref):
    h = jnp.dot(x_ref[...], w1_ref[...], preferred_element_type=jnp.float32)
    h = _gelu_tanh(h + b1_ref[...])
    # TODO(synk): dropout implemented as eval-mode identity (no RNG masking).
    y = jnp.dot(h.astype(w2_ref.dtype), w2_ref[...],
                preferred_element_type=jnp.float32)
    o_ref[...] = (y + b2_ref[...]).astype(o_ref.dtype)


# ----------------------------------------------------------------------------
# Kernel B: F-tiled (mlp_dim streamed in chunks of tf), 2-D grid
#   (row tiles "parallel", F chunks "arbitrary"), f32 accumulator scratch.
# ----------------------------------------------------------------------------
def _mlp_kernel_ftiled(x_ref, w1_ref, b1_ref, w2_ref, b2_ref, o_ref, acc_ref):
    k = pl.program_id(1)

    @pl.when(k == 0)
    def _():
        acc_ref[...] = jnp.zeros_like(acc_ref)

    h = jnp.dot(x_ref[...], w1_ref[...], preferred_element_type=jnp.float32)
    h = _gelu_tanh(h + b1_ref[...])       # padded F columns: gelu(0+0)=0, safe
    acc_ref[...] += jnp.dot(h.astype(w2_ref.dtype), w2_ref[...],
                            preferred_element_type=jnp.float32)

    @pl.when(k == pl.num_programs(1) - 1)
    def _():
        o_ref[...] = (acc_ref[...] + b2_ref[...]).astype(o_ref.dtype)


# ----------------------------------------------------------------------------
# One-time parameter packing (hoisted out of the per-call path).
# ----------------------------------------------------------------------------
def pack_mlp_params(fc1_w, fc1_b, fc2_w, fc2_b):
    """PyTorch Linear layout (out, in) -> transposed, bf16, 128-padded."""
    F, H = fc1_w.shape
    assert fc2_w.shape == (H, F)
    Hp = _round_up(H, 128)
    Fp = _round_up(F, 128)
    w1 = jnp.pad(fc1_w.T.astype(jnp.bfloat16), ((0, Hp - H), (0, Fp - F)))
    b1 = jnp.pad(fc1_b.astype(jnp.float32), (0, Fp - F)).reshape(1, Fp)
    w2 = jnp.pad(fc2_w.T.astype(jnp.bfloat16), ((0, Fp - F), (0, Hp - H)))
    b2 = jnp.pad(fc2_b.astype(jnp.float32), (0, Hp - H)).reshape(1, Hp)
    return w1, b1, w2, b2


@functools.partial(jax.jit,
                   static_argnames=("out_dtype", "force_f_tiled", "f_block"))
def mlp_forward(x, w1, b1, w2, b2, *, out_dtype=jnp.float32,
                force_f_tiled=False, f_block=None):
    """x: (B, S, hidden) f32. w/b: packed via pack_mlp_params."""
    B, S, H = x.shape
    Hp, Fp = w1.shape
    M = B * S
    tm = _pick_tm(M)
    Mp = _round_up(M, tm)
    out_itemsize = np.dtype(out_dtype).itemsize

    # Cast first, pad second (half the wrapper-side copy bandwidth); skip
    # padding entirely when already aligned.
    x2 = x.reshape(M, H).astype(jnp.bfloat16)
    if (Mp, Hp) != (M, H):
        x2 = jnp.pad(x2, ((0, Mp - M), (0, Hp - H)))

    cap = _vmem_capacity_bytes()
    resident_bytes = _resident_footprint(tm, Hp, Fp, out_itemsize)
    use_resident = (not force_f_tiled) and resident_bytes <= int(cap * 0.65)

    if use_resident:
        vmem_limit = int(min(cap * 0.9,
                             max(32 << 20, 2 * resident_bytes + (2 << 20))))
        out = pl.pallas_call(
            _mlp_kernel_resident,
            out_shape=jax.ShapeDtypeStruct((Mp, Hp), out_dtype),
            grid_spec=pltpu.PrefetchScalarGridSpec(
                num_scalar_prefetch=0,
                grid=(Mp // tm,),
                in_specs=[
                    pl.BlockSpec((tm, Hp), lambda i: (i, 0)),   # x row tile
                    # Grid-invariant operands: single-buffered (no 2x VMEM).
                    pl.BlockSpec((Hp, Fp), lambda i: (0, 0),
                                 pipeline_mode=pl.Buffered(1)),
                    pl.BlockSpec((1, Fp), lambda i: (0, 0),
                                 pipeline_mode=pl.Buffered(1)),
                    pl.BlockSpec((Fp, Hp), lambda i: (0, 0),
                                 pipeline_mode=pl.Buffered(1)),
                    pl.BlockSpec((1, Hp), lambda i: (0, 0),
                                 pipeline_mode=pl.Buffered(1)),
                ],
                out_specs=pl.BlockSpec((tm, Hp), lambda i: (i, 0)),
            ),
            compiler_params=pltpu.CompilerParams(
                dimension_semantics=("parallel",),
                vmem_limit_bytes=vmem_limit),
        )(x2, w1, b1, w2, b2)
    else:
        tf = f_block if f_block is not None else _pick_tf(Fp)
        assert tf % 128 == 0 and Fp % tf == 0, "f_block must divide padded F"
        vmem_limit = int(min(
            cap * 0.9,
            max(32 << 20,
                2 * _ftiled_footprint(tm, tf, Hp, out_itemsize) + (2 << 20))))
        out = pl.pallas_call(
            _mlp_kernel_ftiled,
            out_shape=jax.ShapeDtypeStruct((Mp, Hp), out_dtype),
            grid_spec=pltpu.PrefetchScalarGridSpec(
                num_scalar_prefetch=0,
                grid=(Mp // tm, Fp // tf),
                in_specs=[
                    pl.BlockSpec((tm, Hp), lambda i, k: (i, 0)),  # x (held over k)
                    pl.BlockSpec((Hp, tf), lambda i, k: (0, k)),  # w1 col chunk
                    pl.BlockSpec((1, tf), lambda i, k: (0, k)),   # b1 chunk
                    pl.BlockSpec((tf, Hp), lambda i, k: (k, 0)),  # w2 row chunk
                    pl.BlockSpec((1, Hp), lambda i, k: (0, 0)),   # b2
                ],
                out_specs=pl.BlockSpec((tm, Hp), lambda i, k: (i, 0)),
                scratch_shapes=[pltpu.VMEM((tm, Hp), jnp.float32)],
            ),
            compiler_params=pltpu.CompilerParams(
                dimension_semantics=("parallel", "arbitrary"),
                vmem_limit_bytes=vmem_limit),
        )(x2, w1, b1, w2, b2)

    if (Mp, Hp) != (M, H):
        out = out[:M, :H]
    return out.reshape(B, S, H)


# ----------------------------------------------------------------------------
# Pure-JAX f32 reference (exact erf GELU, PyTorch Linear semantics).
# ----------------------------------------------------------------------------
def mlp_reference(x, fc1_w, fc1_b, fc2_w, fc2_b):
    h = jnp.einsum("bsh,fh->bsf", x, fc1_w) + fc1_b
    h = jax.nn.gelu(h, approximate=False)
    y = jnp.einsum("bsf,hf->bsh", h, fc2_w) + fc2_b
    return y


if __name__ == "__main__":
    # Small shapes consistent with the module: B=2, seq=8, hidden=32, mlp_dim=256.
    B, S, hidden, mlp_dim = 2, 8, 32, 256

    key = jax.random.PRNGKey(0)
    k_x, k_w1, k_b1, k_w2, k_b2 = jax.random.split(key, 5)

    x = jax.random.normal(k_x, (B, S, hidden), jnp.float32)

    # Xavier-uniform weights, tiny normal biases (matches _init_weights).
    limit = (6.0 / (hidden + mlp_dim)) ** 0.5
    fc1_w = jax.random.uniform(k_w1, (mlp_dim, hidden), jnp.float32, -limit, limit)
    fc1_b = 1e-6 * jax.random.normal(k_b1, (mlp_dim,), jnp.float32)
    fc2_w = jax.random.uniform(k_w2, (hidden, mlp_dim), jnp.float32, -limit, limit)
    fc2_b = 1e-6 * jax.random.normal(k_b2, (hidden,), jnp.float32)

    packed = pack_mlp_params(fc1_w, fc1_b, fc2_w, fc2_b)   # packed once, reused
    ref = mlp_reference(x, fc1_w, fc1_b, fc2_w, fc2_b)

    # Path 1: auto-selected (resident weights for these small shapes).
    out_res = jax.block_until_ready(mlp_forward(x, *packed))
    assert out_res.shape == (B, S, hidden)
    # bf16 MXU inputs + tanh-GELU vs exact f32 reference -> loose-ish tolerance.
    assert jnp.allclose(out_res, ref, atol=3e-2, rtol=3e-2), "resident path mismatch"

    # Path 2: F-tiled accumulator variant (forced; 2 F-steps of 128 each).
    out_ft = jax.block_until_ready(
        mlp_forward(x, *packed, force_f_tiled=True, f_block=128))
    assert out_ft.shape == (B, S, hidden)
    assert jnp.allclose(out_ft, ref, atol=3e-2, rtol=3e-2), "F-tiled path mismatch"
    assert jnp.allclose(out_res, out_ft, atol=1e-3, rtol=1e-3), "path disagreement"

    print("KERNEL_OK")
</pallas_src>

<mosaic_0001>
module attributes {stable_mosaic.version = 11 : i64} {
  func.func @_mlp_kernel_resident(%arg0: i32, %arg1: memref<16x128xbf16, #tpu.memory_space<vmem>>, %arg2: memref<128x256xbf16, #tpu.memory_space<vmem>>, %arg3: memref<1x256xf32, #tpu.memory_space<vmem>>, %arg4: memref<256x128xbf16, #tpu.memory_space<vmem>>, %arg5: memref<1x128xf32, #tpu.memory_space<vmem>>, %arg6: memref<16x128xf32, #tpu.memory_space<vmem>>) attributes {dimension_semantics = [#tpu.dimension_semantics<parallel>], iteration_bounds = array<i64: 1>, scalar_prefetch = 0 : i64, scratch_operands = 0 : i64, tpu.core_type = #tpu.core_type<tc>, window_params = [{transform_indices = @transform_0, window_bounds = array<i64: 16, 128>}, {pipeline_mode = #tpu.pipeline_mode<synchronous>, transform_indices = @transform_1, window_bounds = array<i64: 128, 256>}, {pipeline_mode = #tpu.pipeline_mode<synchronous>, transform_indices = @transform_2, window_bounds = array<i64: 1, 256>}, {pipeline_mode = #tpu.pipeline_mode<synchronous>, transform_indices = @transform_3, window_bounds = array<i64: 256, 128>}, {pipeline_mode = #tpu.pipeline_mode<synchronous>, transform_indices = @transform_4, window_bounds = array<i64: 1, 128>}, {transform_indices = @transform_5, window_bounds = array<i64: 16, 128>}]} {
    %c0 = arith.constant 0 : index
    %c0_0 = arith.constant 0 : index
    %0 = vector.load %arg1[%c0, %c0_0] : memref<16x128xbf16, #tpu.memory_space<vmem>>, vector<16x128xbf16>
    %c0_1 = arith.constant 0 : index
    %c0_2 = arith.constant 0 : index
    %1 = vector.load %arg2[%c0_1, %c0_2] : memref<128x256xbf16, #tpu.memory_space<vmem>>, vector<128x256xbf16>
    %cst = arith.constant dense<0.000000e+00> : vector<16x256xf32>
    %2 = tpu.matmul %0, %1, %cst {dimension_numbers = #tpu.dot_dimension_numbers<[1], [0], [0], [1], [0, 0, 1, 1], [], []>} : vector<16x128xbf16>, vector<128x256xbf16>, vector<16x256xf32> -> vector<16x256xf32>
    %c0_3 = arith.constant 0 : index
    %c0_4 = arith.constant 0 : index
    %3 = vector.load %arg3[%c0_3, %c0_4] : memref<1x256xf32, #tpu.memory_space<vmem>>, vector<1x256xf32>
    %4 = vector.broadcast %3 : vector<1x256xf32> to vector<16x256xf32>
    %5 = arith.addf %2, %4 : vector<16x256xf32>
    %cst_5 = arith.constant 5.000000e-01 : f32
    %6 = vector.broadcast %cst_5 : f32 to vector<16x256xf32>
    %7 = arith.mulf %6, %5 : vector<16x256xf32>
    %cst_6 = arith.constant 4.471500e-02 : f32
    %8 = vector.broadcast %cst_6 : f32 to vector<16x256xf32>
    %9 = arith.mulf %8, %5 : vector<16x256xf32>
    %10 = arith.mulf %9, %5 : vector<16x256xf32>
    %11 = arith.mulf %10, %5 : vector<16x256xf32>
    %12 = arith.addf %5, %11 : vector<16x256xf32>
    %cst_7 = arith.constant 0.797884583 : f32
    %13 = vector.broadcast %cst_7 : f32 to vector<16x256xf32>
    %14 = arith.mulf %13, %12 : vector<16x256xf32>
    %15 = math.tanh %14 : vector<16x256xf32>
    %cst_8 = arith.constant 1.000000e+00 : f32
    %16 = vector.broadcast %cst_8 : f32 to vector<16x256xf32>
    %17 = arith.addf %16, %15 : vector<16x256xf32>
    %18 = arith.mulf %7, %17 : vector<16x256xf32>
    %19 = arith.truncf %18 : vector<16x256xf32> to vector<16x256xbf16>
    %c0_9 = arith.constant 0 : index
    %c0_10 = arith.constant 0 : index
    %20 = vector.load %arg4[%c0_9, %c0_10] : memref<256x128xbf16, #tpu.memory_space<vmem>>, vector<256x128xbf16>
    %cst_11 = arith.constant dense<0.000000e+00> : vector<16x128xf32>
    %21 = tpu.matmul %19, %20, %cst_11 {dimension_numbers = #tpu.dot_dimension_numbers<[1], [0], [0], [1], [0, 0, 1, 1], [], []>} : vector<16x256xbf16>, vector<256x128xbf16>, vector<16x128xf32> -> vector<16x128xf32>
    %c0_12 = arith.constant 0 : index
    %c0_13 = arith.constant 0 : index
    %22 = vector.load %arg5[%c0_12, %c0_13] : memref<1x128xf32, #tpu.memory_space<vmem>>, vector<1x128xf32>
    %23 = vector.broadcast %22 : vector<1x128xf32> to vector<16x128xf32>
    %24 = arith.addf %21, %23 : vector<16x128xf32>
    %c0_14 = arith.constant 0 : index
    %c0_15 = arith.constant 0 : index
    %25 = vector.load %arg6[%c0_14, %c0_15] : memref<16x128xf32, #tpu.memory_space<vmem>>, vector<16x128xf32>
    tpu.vector_store %arg6[%c0_14, %c0_15], %24 {strides = array<i32>} : memref<16x128xf32, #tpu.memory_space<vmem>>, vector<16x128xf32>,
    return
  }
  func.func @transform_0(%arg0: i32) -> (i32, i32) {
    %c0_i32 = arith.constant 0 : i32
    %c0_i32_0 = arith.constant 0 : i32
    return %arg0, %c0_i32 : i32, i32
  }
  func.func @transform_1(%arg0: i32) -> (i32, i32) {
    %c0_i32 = arith.constant 0 : i32
    %c0_i32_0 = arith.constant 0 : i32
    %c0_i32_1 = arith.constant 0 : i32
    return %c0_i32, %c0_i32_0 : i32, i32
  }
  func.func @transform_2(%arg0: i32) -> (i32, i32) {
    %c0_i32 = arith.constant 0 : i32
    %c0_i32_0 = arith.constant 0 : i32
    %c0_i32_1 = arith.constant 0 : i32
    return %c0_i32, %c0_i32_0 : i32, i32
  }
  func.func @transform_3(%arg0: i32) -> (i32, i32) {
    %c0_i32 = arith.constant 0 : i32
    %c0_i32_0 = arith.constant 0 : i32
    %c0_i32_1 = arith.constant 0 : i32
    return %c0_i32, %c0_i32_0 : i32, i32
  }
  func.func @transform_4(%arg0: i32) -> (i32, i32) {
    %c0_i32 = arith.constant 0 : i32
    %c0_i32_0 = arith.constant 0 : i32
    %c0_i32_1 = arith.constant 0 : i32
    return %c0_i32, %c0_i32_0 : i32, i32
  }
  func.func @transform_5(%arg0: i32) -> (i32, i32) {
    %c0_i32 = arith.constant 0 : i32
    %c0_i32_0 = arith.constant 0 : i32
    return %arg0, %c0_i32 : i32, i32
  }
}

</mosaic_0001>

<bundles_post_ra>
// kernel: mlp_forward.1
= control target key start
LH: loop header
LB: loop body
LE: loop exit
PB: predicated region body
PF: predicated region fallthrough
CT: control target
= control target key end

     0   :  { %10 = vsyncpa [#allocation3], 0  ;;  %s666_s0 = inlined_call_operand.vmem [shape: bf16[16,128], index: 0, kind: input, shape index: {}]   ;;  %s667_s1 = inlined_call_operand.hbm [shape: bf16[128,256], index: 1, kind: input, shape index: {}]   ;;  %s668_s2 = inlined_call_operand.vmem [shape: f32[1,256], index: 2, kind: input, shape index: {}]   ;;  %s669_s3 = inlined_call_operand.hbm [shape: bf16[256,128], index: 3, kind: input, shape index: {}]   ;;  %s670_s4 = inlined_call_operand.vmem [shape: f32[1,128], index: 4, kind: input, shape index: {}]   ;;  %s671_s5 = inlined_call_operand.vmem [shape: f32[16,128], index: 5, kind: output, shape index: {}]  }
   0x1   :  { %11 = vsyncpa [#allocation5], 0  ;;  %s590_s18 = smov [#allocation2]   ;;  %s542_s22 = scalar_lea.hbm %s667_s1, 2048 }
   0x2   :  { %s19_s19 = sshll.u32 %s590_s18, 4  ;;  %p543_p0 = scmp.ne.s32.totalorder %s667_s1, %s542_s22  ;;  %s20_s19 = int_to_ptr.vmem [resolvable:$true] %s19_s19 }
   0x3   :  { %p546_p1 = scmp.lt.u32.totalorder %s542_s22, %s667_s1 }
   0x5   :  { %p548_p2 = pnand %p546_p1, %p543_p0 }
   0x7   :  { %551 = shalt.err (!%p548_p2)
}
   0x8   :  { %s552_s27 = scalar_lea.vmem %s20_s19, 2048  ;;  %p557_p4 = scmp.lt.s32.totalorder %s20_s19, %s20_s19 }
   0x9   :  { %p553_p3 = scmp.ne.s32.totalorder %s20_s19, %s552_s27  ;;  %p558_p5 = scmp.lt.s32.totalorder %s552_s27, %s552_s27 }
   0xb   :  { %p559_p6 = por %p558_p5, %p557_p4 }
   0xd   :  { %p560_p7 = pnand %p559_p6, %p553_p3 }
   0xf   :  { %563 = shalt.err (!%p560_p7)
}
  0x10   :  { %s591_s28 = smov 128   ;;  %s592_s29 = smov 8  }
  0x11   :  { %25 = dma.hbm_to_vmem [thread:$0]  %s667_s1, 2048, %s20_s19, [#allocation3], %s591_s28, %s591_s28, %s592_s29  }
  0x12   :  { %s593_s7 = smov [#allocation4]   ;;  %s564_s11 = scalar_lea.hbm %s669_s3, 2048 }
  0x13   :  { %s33_s8 = sshll.u32 %s593_s7, 4  ;;  %p565_p8 = scmp.ne.s32.totalorder %s669_s3, %s564_s11  ;;  %s34_s8 = int_to_ptr.vmem [resolvable:$true] %s33_s8 }
  0x14   :  { %p568_p9 = scmp.lt.u32.totalorder %s564_s11, %s669_s3 }
  0x16   :  { %p570_p10 = pnand %p568_p9, %p565_p8 }
  0x18   :  { %573 = shalt.err (!%p570_p10)
}
  0x19   :  { %s574_s16 = scalar_lea.vmem %s34_s8, 2048  ;;  %p579_p12 = scmp.lt.s32.totalorder %s34_s8, %s34_s8 }
  0x1a   :  { %p575_p11 = scmp.ne.s32.totalorder %s34_s8, %s574_s16  ;;  %p580_p13 = scmp.lt.s32.totalorder %s574_s16, %s574_s16 }
  0x1c   :  { %p581_p0 = por %p580_p13, %p579_p12 }
  0x1e   :  { %p582_p1 = pnand %p581_p0, %p575_p11 }
  0x20   :  { %585 = shalt.err (!%p582_p1)
}
  0x21   :  { %s594_s1 = smov 64   ;;  %s595_s17 = smov 4  }
  0x22   :  { %39 = dma.hbm_to_vmem [thread:$0]  %s669_s3, 2048, %s34_s8, [#allocation5], %s594_s1, %s594_s1, %s595_s17  }
  0x23   :  { %586 = dma.done.wait [#allocation3], 2048  }
  0x24   :  { %587 = vsyncadd [#allocation3], 4294965248 }
  0x25   :  { %588 = dma.done.wait [#allocation5], 2048  }
  0x26   :  { %589 = vsyncadd [#allocation5], 4294965248  ;;  %v596_v0 = vmov 0   ;;  %v493_v1 = vld [vmem:[#allocation2 + $0x4] ss:$8 sps:$4 sm:$0xff]   ;;  %v522_v22 = vld [vmem:[#allocation4 + $0x50] sm:$0xff]   ;;  %v69_v34 = vlaneseq }
  0x27   :  { %197 = vmatprep.mubr.bf16.mxu0 %v596_v0  ;;  %v495_v2 = vld [vmem:[#allocation2] ss:$8 sps:$4 sm:$0xff]   ;;  %165 = vmatprep.subr.bf16.mxu0 %v493_v1  ;;  %v496_v3 = vld [vmem:[#allocation2 + $0x14] ss:$8 sps:$4 sm:$0xff]   ;;  %v498_v4 = vld [vmem:[#allocation2 + $0x10] ss:$8 sps:$4 sm:$0xff]  }
  0x28   :  { %166 = vmatpush1.bf16.msra.mxu0 %v495_v2  ;;  %v499_v5 = vld [vmem:[#allocation2 + $0x24] ss:$8 sps:$4 sm:$0xff]   ;;  %v501_v6 = vld [vmem:[#allocation2 + $0x20] ss:$8 sps:$4 sm:$0xff]   ;;  %v502_v7 = vld [vmem:[#allocation2 + $0x34] ss:$8 sps:$4 sm:$0xff]  }
  0x29   :  { %167 = vmatprep.subr.bf16.mxu0 %v496_v3  ;;  %v504_v8 = vld [vmem:[#allocation2 + $0x30] ss:$8 sps:$4 sm:$0xff]   ;;  %v505_v9 = vld [vmem:[#allocation2 + $0x44] ss:$8 sps:$4 sm:$0xff]   ;;  %v507_v10 = vld [vmem:[#allocation2 + $0x40] ss:$8 sps:$4 sm:$0xff]  }
  0x2a   :  { %v508_v11 = vld [vmem:[#allocation2 + $0x54] ss:$8 sps:$4 sm:$0xff]   ;;  %v510_v12 = vld [vmem:[#allocation2 + $0x50] ss:$8 sps:$4 sm:$0xff]   ;;  %v511_v13 = vld [vmem:[#allocation2 + $0x64] ss:$8 sps:$4 sm:$0xff]  }
  0x2b   :  { %v513_v14 = vld [vmem:[#allocation2 + $0x60] ss:$8 sps:$4 sm:$0xff]   ;;  %v514_v15 = vld [vmem:[#allocation2 + $0x74] ss:$8 sps:$4 sm:$0xff]   ;;  %v516_v16 = vld [vmem:[#allocation2 + $0x70] ss:$8 sps:$4 sm:$0xff]  }
  0x2c   :  { %168 = vmatpush1.bf16.msra.mxu0 %v498_v4  ;;  %v517_v17 = vld [vmem:[%s666_s0] sm:$0xff]   ;;  %v520_v20 = vld [vmem:[#allocation4 + $0x48] sm:$0xff]   ;;  %v523_v23 = vld [vmem:[#allocation4 + $0x10] sm:$0xff]   ;;  %v70_v35 = vshrl.u32 %v69_v34, 7 }
  0x2d   :  { %169 = vmatprep.subr.bf16.mxu0 %v499_v5  ;;  %v518_v18 = vld [vmem:[#allocation4 + $0x40] sm:$0xff]   ;;  %v521_v21 = vld [vmem:[#allocation4 + $0x8] sm:$0xff]   ;;  %v524_v24 = vld [vmem:[#allocation4 + $0x58] sm:$0xff]  }
  0x2e   :  { %v519_v19 = vld [vmem:[#allocation4] sm:$0xff]   ;;  %464 = vmatprep.subr.bf16.mxu1 %v518_v18  ;;  %v525_v25 = vld [vmem:[#allocation4 + $0x18] sm:$0xff]   ;;  %v528_v28 = vld [vmem:[#allocation4 + $0x68] sm:$0xff]   ;;  %v71_v36 = vsub.s32 0, %v70_v35  ;;  %v75_v38 = vsub.s32 1, %v70_v35 }
  0x2f   :  { %465 = vmatpush3.bf16.msra.mxu1 %v519_v19  ;;  %v526_v26 = vld [vmem:[#allocation4 + $0x60] sm:$0xff]   ;;  %v529_v29 = vld [vmem:[#allocation4 + $0x28] sm:$0xff]   ;;  %v530_v30 = vld [vmem:[#allocation4 + $0x70] sm:$0xff]  }
  0x30   :  { %170 = vmatpush1.bf16.msra.mxu0 %v501_v6  ;;  %466 = vmatprep.subr.bf16.mxu1 %v520_v20  ;;  %v527_v27 = vld [vmem:[#allocation4 + $0x20] sm:$0xff]   ;;  %v531_v31 = vld [vmem:[#allocation4 + $0x30] sm:$0xff]   ;;  %v532_v32 = vld [vmem:[#allocation4 + $0x78] sm:$0xff]  }
  0x31   :  { %171 = vmatprep.subr.bf16.mxu0 %v502_v7  ;;  %v533_v33 = vld [vmem:[#allocation4 + $0x38] sm:$0xff]   ;;  %v67_v37 = vld [vmem:[%s668_s2] sm:$0x3] }
  0x32   :  { %v72_v39 = vrot.slane %v67_v37, %v71_v36  ;;  %v76_v40 = vrot.slane %v67_v37, %v75_v38 }
  0x33   :  { %467 = vmatpush3.bf16.msra.mxu1 %v521_v21 }
  0x34   :  { %172 = vmatpush1.bf16.msra.mxu0 %v504_v8  ;;  %468 = vmatprep.subr.bf16.mxu1 %v522_v22 }
  0x35   :  { %173 = vmatprep.subr.bf16.mxu0 %v505_v9 }
  0x37   :  { %469 = vmatpush3.bf16.msra.mxu1 %v523_v23 }
  0x38   :  { %174 = vmatpush1.bf16.msra.mxu0 %v507_v10  ;;  %470 = vmatprep.subr.bf16.mxu1 %v524_v24  ;;  %v447_v24 = vld [vmem:[%s670_s4] ss:$0 sm:$0xff] }
  0x39   :  { %175 = vmatprep.subr.bf16.mxu0 %v508_v11 }
  0x3b   :  { %471 = vmatpush3.bf16.msra.mxu1 %v525_v25 }
  0x3c   :  { %176 = vmatpush1.bf16.msra.mxu0 %v510_v12  ;;  %472 = vmatprep.subr.bf16.mxu1 %v526_v26 }
  0x3d   :  { %177 = vmatprep.subr.bf16.mxu0 %v511_v13 }
  0x3f   :  { %473 = vmatpush3.bf16.msra.mxu1 %v527_v27 }
  0x40   :  { %178 = vmatpush1.bf16.msra.mxu0 %v513_v14  ;;  %474 = vmatprep.subr.bf16.mxu1 %v528_v28 }
  0x41   :  { %179 = vmatprep.subr.bf16.mxu0 %v514_v15 }
  0x43   :  { %475 = vmatpush3.bf16.msra.mxu1 %v529_v29 }
  0x44   :  { %180 = vmatpush1.bf16.msra.mxu0 %v516_v16  ;;  %476 = vmatprep.subr.bf16.mxu1 %v530_v30 }
  0x47   :  { %198 = vmatmul.mubr.bf16.vlgmr.msra.gmra.mrb[0].mxu0 %v517_v17  ;;  %477 = vmatpush3.bf16.msra.mxu1 %v531_v31 }
  0x48   :  { %478 = vmatprep.subr.bf16.mxu1 %v532_v32 }
  0x4b   :  { %479 = vmatpush3.bf16.msra.mxu1 %v533_v33 }
 0x11a   :  { %v199_v41 = vpop.f32.mrb[0].mxu0 }
 0x11b   :  { %v200_v42 = vadd.f32 %v199_v41, %v72_v39  ;;  %v201_v43 = vpop.f32.mrb[1].mxu0 }
 0x11c   :  { %v202_v44 = vadd.f32 %v201_v43, %v76_v40  ;;  %v203_v45 = vpop.f32.mrb[2].mxu0 }
 0x11d   :  { %v212_v46 = vmul.f32 0.044715, %v200_v42  ;;  %v204_v47 = vadd.f32 %v203_v45, %v72_v39  ;;  %v205_v48 = vpop.f32.mrb[3].mxu0  ;;  %v208_v11 = vmul.f32 0.5, %v200_v42 }
 0x11e   :  { %v213_v49 = vmul.f32 0.044715, %v202_v44  ;;  %v206_v50 = vadd.f32 %v205_v48, %v76_v40  ;;  %v209_v14 = vmul.f32 0.5, %v202_v44 }
 0x11f   :  { %v216_v51 = vmul.f32 %v212_v46, %v200_v42  ;;  %v214_v52 = vmul.f32 0.044715, %v204_v47  ;;  %v210_v12 = vmul.f32 0.5, %v204_v47 }
 0x120   :  { %v215_v53 = vmul.f32 0.044715, %v206_v50  ;;  %v217_v54 = vmul.f32 %v213_v49, %v202_v44  ;;  %v211_v15 = vmul.f32 0.5, %v206_v50 }
 0x121   :  { %v220_v55 = vmul.f32 %v216_v51, %v200_v42  ;;  %v218_v56 = vmul.f32 %v214_v52, %v204_v47 }
 0x122   :  { %v219_v57 = vmul.f32 %v215_v53, %v206_v50  ;;  %v221_v58 = vmul.f32 %v217_v54, %v202_v44 }
 0x123   :  { %v222_v59 = vmul.f32 %v218_v56, %v204_v47  ;;  %v224_v60 = vadd.f32 %v220_v55, %v200_v42 }
 0x124   :  { %v223_v61 = vmul.f32 %v219_v57, %v206_v50  ;;  %v225_v62 = vadd.f32 %v221_v58, %v202_v44 }
 0x125   :  { %v226_v63 = vadd.f32 %v222_v59, %v204_v47  ;;  %v228_v0 = vmul.f32 0.7978846, %v224_v60 }
 0x126   :  { %v227_v1 = vadd.f32 %v223_v61, %v206_v50  ;;  %v229_v2 = vmul.f32 0.7978846, %v225_v62 }
 0x127   :  { %v230_v3 = vmul.f32 0.7978846, %v226_v63  ;;  %534 = vtanh.f32 %v228_v0 }
 0x128   :  { %v231_v4 = vmul.f32 0.7978846, %v227_v1  ;;  %536 = vtanh.f32 %v229_v2 }
 0x129   :  { %538 = vtanh.f32 %v230_v3 }
 0x12a   :  { %540 = vtanh.f32 %v231_v4 }
 0x131   :  { %v535_v5 = vpop.eup %534 }
 0x132   :  { %v537_v6 = vpop.eup %536  ;;  %v236_v7 = vadd.f32 1.0, %v535_v5 }
 0x133   :  { %v539_v8 = vpop.eup %538  ;;  %v237_v9 = vadd.f32 1.0, %v537_v6 }
 0x134   :  { %v541_v10 = vpop.eup %540  ;;  %v238_v13 = vadd.f32 1.0, %v539_v8  ;;  %v240_v17 = vmul.f32 %v236_v7, %v208_v11 }
 0x135   :  { %v239_v16 = vadd.f32 1.0, %v541_v10  ;;  %v241_v19 = vmul.f32 %v237_v9, %v209_v14 }
 0x136   :  { %v242_v18 = vmul.f32 %v238_v13, %v210_v12 }
 0x137   :  { %v243_v20 = vmul.f32 %v239_v16, %v211_v15 }
 0x138   :  { %v244_v21 = vpack.c.bf16 %v242_v18, %v240_v17 }
 0x139   :  { %v245_v22 = vpack.c.bf16 %v243_v20, %v241_v19 }
 0x13b   :  { %413 = vmatprep.mubr.bf16.mxu1 %v245_v22 }
 0x13c   :  { %414 = vmatmul.mubr.bf16.vlgmr.msra.gmra.mrb[0].mxu1 %v244_v21 }
 0x20f   :  { %v480_v23 = vpop.f32.mrb[0].mxu1 }
 0x210   :  { %v481_v25 = vpop.f32.mrb[1].mxu1 }
 0x211   :  { %v482_v26 = vadd.f32 %v481_v25, %v480_v23  ;;  %v483_v27 = vpop.f32.mrb[2].mxu1 }
 0x212   :  { %v484_v28 = vpop.f32.mrb[3].mxu1 }
 0x213   :  { %v416_v29 = vadd.f32 %v482_v26, %v447_v24  ;;  %v485_v30 = vadd.f32 %v484_v28, %v483_v27 }
 0x215   :  { %422 = vst [vmem:[%s671_s5] sm:$0xff] %v416_v29  ;;  %v419_v31 = vadd.f32 %v485_v30, %v447_v24 }
 0x217   :  { %423 = vst [vmem:[%s671_s5 + $0x8] sm:$0xff] %v419_v31 }
 0x218   :  { %428 = vsyncpa [#allocation3], 1 }
 0x219   :  { %429 = vsyncpa [#allocation5], 1 }

</bundles_post_ra>
